<compile_context>
chip_gen: v7x
topology: tpu7x:2x2x1
jax: 0.10.0
libtpu: 0.0.40
codegen_flags: <defaults>
</compile_context>

<pallas_src>
import functools

import jax
import jax.numpy as jnp
import numpy as np
from jax import lax
from jax.experimental import pallas as pl
from jax.experimental.pallas import tpu as pltpu


_ACC_BUDGET_BYTES = 128 * 1024   # target size for the two f32 accumulators/block
_UNROLL_CI_MAX = 8               # fully unroll the C_in loop only when small


def _round_up(x, m):
    return ((x + m - 1) // m) * m


def _vmem_capacity_bytes():
    """Per-TC VMEM capacity; conservative fallback = v7x (smallest, 64 MiB)."""
    try:
        cap = getattr(pltpu.get_tpu_info(), "vmem_capacity_bytes", None)
        if cap:
            return int(cap)
    except Exception:
        pass
    return 64 * 1024 * 1024


def _co_tile(Co, B, TM, acc_budget=_ACC_BUDGET_BYTES):
    """Largest C_out tile whose two f32 [B,TCo,TM] accumulators fit the budget.

    Restricted to divisors of Co that keep the output block sublane-legal
    (multiple of 8, or all of Co)."""
    max_tco = max(1, acc_budget // (2 * B * TM * 4))
    legal = [d for d in range(1, Co + 1)
             if Co % d == 0 and (d == Co or d % 8 == 0)]
    fitting = [d for d in legal if d <= max_tco]
    return max(fitting) if fitting else min(legal)


def _plan_tiling(B, Ci, Co, M):
    """Choose (Mp, TM, TCo, vmem_limit_bytes) per TPU generation."""
    Mp = _round_up(M, 128)
    L = 2 * Mp                               # both weight stacks share the lane axis
    cap = _vmem_capacity_bytes()
    # Headroom: never hand the compiler the whole physical VMEM (v7x = 64 MiB).
    budget = min(int(cap * 0.7), 56 * 1024 * 1024)

    def blk_bytes(tm, tco):
        # f32 bytes of one (x, w, out) block set (both real/imag planes).
        return 8 * tm * (B * Ci + Ci * tco + B * tco)

    # Largest lane tile whose double-buffered block set fits the budget;
    # 128 is the always-legal fallback (Mp is a multiple of 128).
    TM = 128
    for cand in (1024, 512, 256):
        if L % cand:
            continue
        if 2 * blk_bytes(cand, _co_tile(Co, B, cand)) + (1 << 20) <= budget:
            TM = cand
            break
    # Keep a few grid steps for DMA/compute overlap when the problem allows it
    # (don't shrink tiles below 256 lanes just for pipeline depth).
    while TM >= 512 and (L // TM) * (Co // _co_tile(Co, B, TM)) < 4:
        TM //= 2
    TCo = _co_tile(Co, B, TM)

    # Always set the scoped-VMEM limit (v5e default is 16 MiB), with headroom
    # for double buffering but never above the per-generation budget.
    vmem_limit = int(min(budget, max(4 * blk_bytes(TM, TCo) + (2 << 20),
                                     16 * 1024 * 1024)))
    return Mp, TM, TCo, vmem_limit


def spectral_mix_kernel(x_ref, w_ref, o_ref):
    """Complex mode mixing: out[b,o,m] = sum_i x[b,i,m] * w[i,o,m].

    x_ref: [2(r/i), B, Ci, TM]    w_ref: [2(r/i), Ci, TCo, TM]
    o_ref: [2(r/i), B, TCo, TM]   (TM lane-dense: multiple of 128)
    """
    _, B, Ci, TM = x_ref.shape
    TCo = w_ref.shape[2]

    def load(ci):
        xr = x_ref[0, :, pl.ds(ci, 1), :]        # [B, 1, TM]
        xi = x_ref[1, :, pl.ds(ci, 1), :]
        wr = w_ref[0, pl.ds(ci, 1), :, :]        # [1, TCo, TM] (broadcast-ready)
        wi = w_ref[1, pl.ds(ci, 1), :, :]
        return xr, xi, wr, wi

    def gauss(xr, xi, wr, wi):
        # 3-multiply Gauss/Karatsuba complex product -> [B, TCo, TM].
        k1 = wr * (xr + xi)
        k2 = (wi - wr) * xr
        k3 = (wr + wi) * xi
        return k1 - k3, k1 + k2                  # (real, imag)

    # Peel ci = 0: initializes the accumulators without a zero+add pass.
    acc_r, acc_i = gauss(*load(0))

    if Ci <= _UNROLL_CI_MAX:
        # Small C_in: full static unroll (short fixed trip count).
        for ci in range(1, Ci):
            pr, pi = gauss(*load(ci))
            acc_r, acc_i = acc_r + pr, acc_i + pi
    else:
        # Large C_in: fori_loop bounds live ranges, keeps vreg pressure flat.
        def body(ci, carry):
            ar, ai = carry
            pr, pi = gauss(*load(ci))
            return ar + pr, ai + pi
        acc_r, acc_i = lax.fori_loop(1, Ci, body, (acc_r, acc_i), unroll=2)

    o_ref[0] = acc_r
    o_ref[1] = acc_i


def prepare_spectral_weights(w1, w2, modes1, modes2):
    """Hoisted out of the forward: pack complex weights once at layer init.

    w1/w2: [Ci, Co, modes1, modes2] complex64
    returns float32 [2(r/i), Ci, Co, 2*Mp]; weights1 modes live in lanes
    [0, M), weights2 modes in lanes [Mp, Mp+M), both zero-padded lane-dense.
    """
    Ci, Co = w1.shape[0], w1.shape[1]
    M = modes1 * modes2
    Mp = _round_up(M, 128)
    wb1 = jnp.reshape(w1, (Ci, Co, M))
    wb2 = jnp.reshape(w2, (Ci, Co, M))
    w = jnp.zeros((2, Ci, Co, 2 * Mp), jnp.float32)
    w = w.at[0, :, :, :M].set(jnp.real(wb1))
    w = w.at[1, :, :, :M].set(jnp.imag(wb1))
    w = w.at[0, :, :, Mp:Mp + M].set(jnp.real(wb2))
    w = w.at[1, :, :, Mp:Mp + M].set(jnp.imag(wb2))
    return w


@functools.partial(jax.jit, static_argnums=(2, 3))
def spectral_conv2d(x, w_packed, modes1, modes2):
    """x: [B, Ci, H, W] float32; w_packed: output of prepare_spectral_weights."""
    B, Ci, H, W = x.shape
    Co = w_packed.shape[2]
    Wf = W // 2 + 1
    M = modes1 * modes2
    Mp, TM, TCo, vmem_limit = _plan_tiling(B, Ci, Co, M)
    L = 2 * Mp

    # --- forward FFT + fused packing into ONE lane-padded buffer -------------
    # TODO(synk): rfft2/irfft2 have no Pallas primitive; kept in XLA.
    x_ft = jnp.fft.rfft2(x, axes=(-2, -1))                   # [B, Ci, H, Wf] c64
    blk1 = x_ft[:, :, :modes1, :modes2].reshape(B, Ci, M)    # low modes
    blk2 = x_ft[:, :, H - modes1:, :modes2].reshape(B, Ci, M)  # negative modes
    xp = jnp.zeros((2, B, Ci, L), jnp.float32)
    xp = xp.at[0, :, :, :M].set(jnp.real(blk1))
    xp = xp.at[1, :, :, :M].set(jnp.imag(blk1))
    xp = xp.at[0, :, :, Mp:Mp + M].set(jnp.real(blk2))
    xp = xp.at[1, :, :, Mp:Mp + M].set(jnp.imag(blk2))

    # --- Pallas kernel: complex mode mixing ----------------------------------
    grid = (L // TM, Co // TCo)
    x_spec = pl.BlockSpec((2, B, Ci, TM), lambda m, co: (0, 0, 0, m))
    w_spec = pl.BlockSpec((2, Ci, TCo, TM), lambda m, co: (0, 0, co, m))
    o_spec = pl.BlockSpec((2, B, TCo, TM), lambda m, co: (0, 0, co, m))

    out = pl.pallas_call(
        spectral_mix_kernel,
        out_shape=jax.ShapeDtypeStruct((2, B, Co, L), jnp.float32),
        grid=grid,
        in_specs=[x_spec, w_spec],
        out_specs=o_spec,
        compiler_params=pltpu.CompilerParams(
            dimension_semantics=("parallel", "parallel"),
            vmem_limit_bytes=vmem_limit),
    )(xp, w_packed)

    # --- unpack, scatter into the full spectrum, inverse FFT -----------------
    out_r, out_i = out[0], out[1]                             # [B, Co, L]
    o1 = (out_r[..., :M] + 1j * out_i[..., :M]
          ).reshape(B, Co, modes1, modes2).astype(jnp.complex64)
    o2 = (out_r[..., Mp:Mp + M] + 1j * out_i[..., Mp:Mp + M]
          ).reshape(B, Co, modes1, modes2).astype(jnp.complex64)

    out_ft = jnp.zeros((B, Co, H, Wf), dtype=jnp.complex64)
    out_ft = out_ft.at[:, :, :modes1, :modes2].set(o1)
    out_ft = out_ft.at[:, :, H - modes1:, :modes2].set(o2)
    return jnp.fft.irfft2(out_ft, s=(H, W), axes=(-2, -1)).astype(jnp.float32)


def _reference(x, w1, w2, modes1, modes2):
    # Pure-JAX reference mirroring the PyTorch module exactly.
    B, Ci, H, W = x.shape
    Co = w1.shape[1]
    x_ft = jnp.fft.rfft2(x, axes=(-2, -1))
    out_ft = jnp.zeros((B, Co, H, W // 2 + 1), dtype=jnp.complex64)
    out_ft = out_ft.at[:, :, :modes1, :modes2].set(
        jnp.einsum('bixt,ioxt->boxt', x_ft[:, :, :modes1, :modes2], w1))
    out_ft = out_ft.at[:, :, H - modes1:, :modes2].set(
        jnp.einsum('bixt,ioxt->boxt', x_ft[:, :, H - modes1:, :modes2], w2))
    return jnp.fft.irfft2(out_ft, s=(H, W), axes=(-2, -1)).astype(jnp.float32)


if __name__ == "__main__":
    B, Ci, Co, H, W = 2, 4, 4, 16, 16
    modes1, modes2 = 6, 6

    key = jax.random.PRNGKey(0)
    kx, kw1r, kw1i, kw2r, kw2i = jax.random.split(key, 5)

    x = jax.random.normal(kx, (B, Ci, H, W), dtype=jnp.float32)

    # Deterministic parameter init: scale * rand(complex), matching torch.rand(cfloat)
    scale = 1.0 / (Ci * Co)
    w1 = (scale * (jax.random.uniform(kw1r, (Ci, Co, modes1, modes2))
                   + 1j * jax.random.uniform(kw1i, (Ci, Co, modes1, modes2)))
          ).astype(jnp.complex64)
    w2 = (scale * (jax.random.uniform(kw2r, (Ci, Co, modes1, modes2))
                   + 1j * jax.random.uniform(kw2i, (Ci, Co, modes1, modes2)))
          ).astype(jnp.complex64)

    # Weight packing hoisted out of the forward (per-layer, done once at init).
    w_packed = jax.block_until_ready(
        prepare_spectral_weights(w1, w2, modes1, modes2))

    out = jax.block_until_ready(spectral_conv2d(x, w_packed, modes1, modes2))
    ref = jax.block_until_ready(_reference(x, w1, w2, modes1, modes2))

    assert out.shape == (B, Co, H, W)
    assert np.allclose(np.asarray(out), np.asarray(ref), atol=1e-4, rtol=1e-4)

    print("KERNEL_OK")
</pallas_src>

<mosaic_0001>
module attributes {stable_mosaic.version = 11 : i64} {
  func.func @spectral_mix_kernel(%arg0: i32, %arg1: i32, %arg2: memref<2x2x4x256xf32, #tpu.memory_space<vmem>>, %arg3: memref<2x4x4x256xf32, #tpu.memory_space<vmem>>, %arg4: memref<2x2x4x256xf32, #tpu.memory_space<vmem>>) attributes {dimension_semantics = [#tpu.dimension_semantics<parallel>, #tpu.dimension_semantics<parallel>], iteration_bounds = array<i64: 1, 1>, scalar_prefetch = 0 : i64, scratch_operands = 0 : i64, tpu.core_type = #tpu.core_type<tc>, window_params = [{transform_indices = @transform_0, window_bounds = array<i64: 2, 2, 4, 256>}, {transform_indices = @transform_1, window_bounds = array<i64: 2, 4, 4, 256>}, {transform_indices = @transform_2, window_bounds = array<i64: 2, 2, 4, 256>}]} {
    %c0 = arith.constant 0 : index
    %c0_0 = arith.constant 0 : index
    %c0_1 = arith.constant 0 : index
    %c0_2 = arith.constant 0 : index
    %0 = vector.load %arg2[%c0, %c0_0, %c0_1, %c0_2] : memref<2x2x4x256xf32, #tpu.memory_space<vmem>>, vector<1x2x1x256xf32>
    %1 = vector.shape_cast %0 : vector<1x2x1x256xf32> to vector<2x1x256xf32>
    %c1 = arith.constant 1 : index
    %c0_3 = arith.constant 0 : index
    %c0_4 = arith.constant 0 : index
    %c0_5 = arith.constant 0 : index
    %2 = vector.load %arg2[%c1, %c0_3, %c0_4, %c0_5] : memref<2x2x4x256xf32, #tpu.memory_space<vmem>>, vector<1x2x1x256xf32>
    %3 = vector.shape_cast %2 : vector<1x2x1x256xf32> to vector<2x1x256xf32>
    %c0_6 = arith.constant 0 : index
    %c0_7 = arith.constant 0 : index
    %c0_8 = arith.constant 0 : index
    %c0_9 = arith.constant 0 : index
    %4 = vector.load %arg3[%c0_6, %c0_7, %c0_8, %c0_9] : memref<2x4x4x256xf32, #tpu.memory_space<vmem>>, vector<1x1x4x256xf32>
    %5 = vector.shape_cast %4 : vector<1x1x4x256xf32> to vector<1x4x256xf32>
    %c1_10 = arith.constant 1 : index
    %c0_11 = arith.constant 0 : index
    %c0_12 = arith.constant 0 : index
    %c0_13 = arith.constant 0 : index
    %6 = vector.load %arg3[%c1_10, %c0_11, %c0_12, %c0_13] : memref<2x4x4x256xf32, #tpu.memory_space<vmem>>, vector<1x1x4x256xf32>
    %7 = vector.shape_cast %6 : vector<1x1x4x256xf32> to vector<1x4x256xf32>
    %8 = arith.addf %1, %3 : vector<2x1x256xf32>
    %9 = vector.broadcast %5 : vector<1x4x256xf32> to vector<2x4x256xf32>
    %10 = vector.broadcast %8 : vector<2x1x256xf32> to vector<2x4x256xf32>
    %11 = arith.mulf %9, %10 : vector<2x4x256xf32>
    %12 = arith.subf %7, %5 : vector<1x4x256xf32>
    %13 = vector.broadcast %12 : vector<1x4x256xf32> to vector<2x4x256xf32>
    %14 = vector.broadcast %1 : vector<2x1x256xf32> to vector<2x4x256xf32>
    %15 = arith.mulf %13, %14 : vector<2x4x256xf32>
    %16 = arith.addf %5, %7 : vector<1x4x256xf32>
    %17 = vector.broadcast %16 : vector<1x4x256xf32> to vector<2x4x256xf32>
    %18 = vector.broadcast %3 : vector<2x1x256xf32> to vector<2x4x256xf32>
    %19 = arith.mulf %17, %18 : vector<2x4x256xf32>
    %20 = arith.subf %11, %19 : vector<2x4x256xf32>
    %21 = arith.addf %11, %15 : vector<2x4x256xf32>
    %c0_14 = arith.constant 0 : index
    %c0_15 = arith.constant 0 : index
    %c1_16 = arith.constant 1 : index
    %c0_17 = arith.constant 0 : index
    %22 = vector.load %arg2[%c0_14, %c0_15, %c1_16, %c0_17] : memref<2x2x4x256xf32, #tpu.memory_space<vmem>>, vector<1x2x1x256xf32>
    %23 = vector.shape_cast %22 : vector<1x2x1x256xf32> to vector<2x1x256xf32>
    %c1_18 = arith.constant 1 : index
    %c0_19 = arith.constant 0 : index
    %c1_20 = arith.constant 1 : index
    %c0_21 = arith.constant 0 : index
    %24 = vector.load %arg2[%c1_18, %c0_19, %c1_20, %c0_21] : memref<2x2x4x256xf32, #tpu.memory_space<vmem>>, vector<1x2x1x256xf32>
    %25 = vector.shape_cast %24 : vector<1x2x1x256xf32> to vector<2x1x256xf32>
    %c0_22 = arith.constant 0 : index
    %c1_23 = arith.constant 1 : index
    %c0_24 = arith.constant 0 : index
    %c0_25 = arith.constant 0 : index
    %26 = vector.load %arg3[%c0_22, %c1_23, %c0_24, %c0_25] : memref<2x4x4x256xf32, #tpu.memory_space<vmem>>, vector<1x1x4x256xf32>
    %27 = vector.shape_cast %26 : vector<1x1x4x256xf32> to vector<1x4x256xf32>
    %c1_26 = arith.constant 1 : index
    %c1_27 = arith.constant 1 : index
    %c0_28 = arith.constant 0 : index
    %c0_29 = arith.constant 0 : index
    %28 = vector.load %arg3[%c1_26, %c1_27, %c0_28, %c0_29] : memref<2x4x4x256xf32, #tpu.memory_space<vmem>>, vector<1x1x4x256xf32>
    %29 = vector.shape_cast %28 : vector<1x1x4x256xf32> to vector<1x4x256xf32>
    %30 = arith.addf %23, %25 : vector<2x1x256xf32>
    %31 = vector.broadcast %27 : vector<1x4x256xf32> to vector<2x4x256xf32>
    %32 = vector.broadcast %30 : vector<2x1x256xf32> to vector<2x4x256xf32>
    %33 = arith.mulf %31, %32 : vector<2x4x256xf32>
    %34 = arith.subf %29, %27 : vector<1x4x256xf32>
    %35 = vector.broadcast %34 : vector<1x4x256xf32> to vector<2x4x256xf32>
    %36 = vector.broadcast %23 : vector<2x1x256xf32> to vector<2x4x256xf32>
    %37 = arith.mulf %35, %36 : vector<2x4x256xf32>
    %38 = arith.addf %27, %29 : vector<1x4x256xf32>
    %39 = vector.broadcast %38 : vector<1x4x256xf32> to vector<2x4x256xf32>
    %40 = vector.broadcast %25 : vector<2x1x256xf32> to vector<2x4x256xf32>
    %41 = arith.mulf %39, %40 : vector<2x4x256xf32>
    %42 = arith.subf %33, %41 : vector<2x4x256xf32>
    %43 = arith.addf %33, %37 : vector<2x4x256xf32>
    %44 = arith.addf %20, %42 : vector<2x4x256xf32>
    %45 = arith.addf %21, %43 : vector<2x4x256xf32>
    %c0_30 = arith.constant 0 : index
    %c0_31 = arith.constant 0 : index
    %c2 = arith.constant 2 : index
    %c0_32 = arith.constant 0 : index
    %46 = vector.load %arg2[%c0_30, %c0_31, %c2, %c0_32] : memref<2x2x4x256xf32, #tpu.memory_space<vmem>>, vector<1x2x1x256xf32>
    %47 = vector.shape_cast %46 : vector<1x2x1x256xf32> to vector<2x1x256xf32>
    %c1_33 = arith.constant 1 : index
    %c0_34 = arith.constant 0 : index
    %c2_35 = arith.constant 2 : index
    %c0_36 = arith.constant 0 : index
    %48 = vector.load %arg2[%c1_33, %c0_34, %c2_35, %c0_36] : memref<2x2x4x256xf32, #tpu.memory_space<vmem>>, vector<1x2x1x256xf32>
    %49 = vector.shape_cast %48 : vector<1x2x1x256xf32> to vector<2x1x256xf32>
    %c0_37 = arith.constant 0 : index
    %c2_38 = arith.constant 2 : index
    %c0_39 = arith.constant 0 : index
    %c0_40 = arith.constant 0 : index
    %50 = vector.load %arg3[%c0_37, %c2_38, %c0_39, %c0_40] : memref<2x4x4x256xf32, #tpu.memory_space<vmem>>, vector<1x1x4x256xf32>
    %51 = vector.shape_cast %50 : vector<1x1x4x256xf32> to vector<1x4x256xf32>
    %c1_41 = arith.constant 1 : index
    %c2_42 = arith.constant 2 : index
    %c0_43 = arith.constant 0 : index
    %c0_44 = arith.constant 0 : index
    %52 = vector.load %arg3[%c1_41, %c2_42, %c0_43, %c0_44] : memref<2x4x4x256xf32, #tpu.memory_space<vmem>>, vector<1x1x4x256xf32>
    %53 = vector.shape_cast %52 : vector<1x1x4x256xf32> to vector<1x4x256xf32>
    %54 = arith.addf %47, %49 : vector<2x1x256xf32>
    %55 = vector.broadcast %51 : vector<1x4x256xf32> to vector<2x4x256xf32>
    %56 = vector.broadcast %54 : vector<2x1x256xf32> to vector<2x4x256xf32>
    %57 = arith.mulf %55, %56 : vector<2x4x256xf32>
    %58 = arith.subf %53, %51 : vector<1x4x256xf32>
    %59 = vector.broadcast %58 : vector<1x4x256xf32> to vector<2x4x256xf32>
    %60 = vector.broadcast %47 : vector<2x1x256xf32> to vector<2x4x256xf32>
    %61 = arith.mulf %59, %60 : vector<2x4x256xf32>
    %62 = arith.addf %51, %53 : vector<1x4x256xf32>
    %63 = vector.broadcast %62 : vector<1x4x256xf32> to vector<2x4x256xf32>
    %64 = vector.broadcast %49 : vector<2x1x256xf32> to vector<2x4x256xf32>
    %65 = arith.mulf %63, %64 : vector<2x4x256xf32>
    %66 = arith.subf %57, %65 : vector<2x4x256xf32>
    %67 = arith.addf %57, %61 : vector<2x4x256xf32>
    %68 = arith.addf %44, %66 : vector<2x4x256xf32>
    %69 = arith.addf %45, %67 : vector<2x4x256xf32>
    %c0_45 = arith.constant 0 : index
    %c0_46 = arith.constant 0 : index
    %c3 = arith.constant 3 : index
    %c0_47 = arith.constant 0 : index
    %70 = vector.load %arg2[%c0_45, %c0_46, %c3, %c0_47] : memref<2x2x4x256xf32, #tpu.memory_space<vmem>>, vector<1x2x1x256xf32>
    %71 = vector.shape_cast %70 : vector<1x2x1x256xf32> to vector<2x1x256xf32>
    %c1_48 = arith.constant 1 : index
    %c0_49 = arith.constant 0 : index
    %c3_50 = arith.constant 3 : index
    %c0_51 = arith.constant 0 : index
    %72 = vector.load %arg2[%c1_48, %c0_49, %c3_50, %c0_51] : memref<2x2x4x256xf32, #tpu.memory_space<vmem>>, vector<1x2x1x256xf32>
    %73 = vector.shape_cast %72 : vector<1x2x1x256xf32> to vector<2x1x256xf32>
    %c0_52 = arith.constant 0 : index
    %c3_53 = arith.constant 3 : index
    %c0_54 = arith.constant 0 : index
    %c0_55 = arith.constant 0 : index
    %74 = vector.load %arg3[%c0_52, %c3_53, %c0_54, %c0_55] : memref<2x4x4x256xf32, #tpu.memory_space<vmem>>, vector<1x1x4x256xf32>
    %75 = vector.shape_cast %74 : vector<1x1x4x256xf32> to vector<1x4x256xf32>
    %c1_56 = arith.constant 1 : index
    %c3_57 = arith.constant 3 : index
    %c0_58 = arith.constant 0 : index
    %c0_59 = arith.constant 0 : index
    %76 = vector.load %arg3[%c1_56, %c3_57, %c0_58, %c0_59] : memref<2x4x4x256xf32, #tpu.memory_space<vmem>>, vector<1x1x4x256xf32>
    %77 = vector.shape_cast %76 : vector<1x1x4x256xf32> to vector<1x4x256xf32>
    %78 = arith.addf %71, %73 : vector<2x1x256xf32>
    %79 = vector.broadcast %75 : vector<1x4x256xf32> to vector<2x4x256xf32>
    %80 = vector.broadcast %78 : vector<2x1x256xf32> to vector<2x4x256xf32>
    %81 = arith.mulf %79, %80 : vector<2x4x256xf32>
    %82 = arith.subf %77, %75 : vector<1x4x256xf32>
    %83 = vector.broadcast %82 : vector<1x4x256xf32> to vector<2x4x256xf32>
    %84 = vector.broadcast %71 : vector<2x1x256xf32> to vector<2x4x256xf32>
    %85 = arith.mulf %83, %84 : vector<2x4x256xf32>
    %86 = arith.addf %75, %77 : vector<1x4x256xf32>
    %87 = vector.broadcast %86 : vector<1x4x256xf32> to vector<2x4x256xf32>
    %88 = vector.broadcast %73 : vector<2x1x256xf32> to vector<2x4x256xf32>
    %89 = arith.mulf %87, %88 : vector<2x4x256xf32>
    %90 = arith.subf %81, %89 : vector<2x4x256xf32>
    %91 = arith.addf %81, %85 : vector<2x4x256xf32>
    %92 = arith.addf %68, %90 : vector<2x4x256xf32>
    %93 = arith.addf %69, %91 : vector<2x4x256xf32>
    %c0_60 = arith.constant 0 : index
    %c0_61 = arith.constant 0 : index
    %c0_62 = arith.constant 0 : index
    %c0_63 = arith.constant 0 : index
    %94 = vector.load %arg4[%c0_60, %c0_61, %c0_62, %c0_63] : memref<2x2x4x256xf32, #tpu.memory_space<vmem>>, vector<1x2x4x256xf32>
    %95 = vector.shape_cast %94 : vector<1x2x4x256xf32> to vector<2x4x256xf32>
    %96 = vector.shape_cast %92 : vector<2x4x256xf32> to vector<1x2x4x256xf32>
    tpu.vector_store %arg4[%c0_60, %c0_61, %c0_62, %c0_63], %96 {strides = array<i32>} : memref<2x2x4x256xf32, #tpu.memory_space<vmem>>, vector<1x2x4x256xf32>,
    %c1_64 = arith.constant 1 : index
    %c0_65 = arith.constant 0 : index
    %c0_66 = arith.constant 0 : index
    %c0_67 = arith.constant 0 : index
    %97 = vector.load %arg4[%c1_64, %c0_65, %c0_66, %c0_67] : memref<2x2x4x256xf32, #tpu.memory_space<vmem>>, vector<1x2x4x256xf32>
    %98 = vector.shape_cast %97 : vector<1x2x4x256xf32> to vector<2x4x256xf32>
    %99 = vector.shape_cast %93 : vector<2x4x256xf32> to vector<1x2x4x256xf32>
    tpu.vector_store %arg4[%c1_64, %c0_65, %c0_66, %c0_67], %99 {strides = array<i32>} : memref<2x2x4x256xf32, #tpu.memory_space<vmem>>, vector<1x2x4x256xf32>,
    return
  }
  func.func @transform_0(%arg0: i32, %arg1: i32) -> (i32, i32, i32, i32) {
    %c0_i32 = arith.constant 0 : i32
    %c0_i32_0 = arith.constant 0 : i32
    %c0_i32_1 = arith.constant 0 : i32
    %c0_i32_2 = arith.constant 0 : i32
    return %c0_i32, %c0_i32_0, %c0_i32_1, %arg0 : i32, i32, i32, i32
  }
  func.func @transform_1(%arg0: i32, %arg1: i32) -> (i32, i32, i32, i32) {
    %c0_i32 = arith.constant 0 : i32
    %c0_i32_0 = arith.constant 0 : i32
    %c0_i32_1 = arith.constant 0 : i32
    return %c0_i32, %c0_i32_0, %arg1, %arg0 : i32, i32, i32, i32
  }
  func.func @transform_2(%arg0: i32, %arg1: i32) -> (i32, i32, i32, i32) {
    %c0_i32 = arith.constant 0 : i32
    %c0_i32_0 = arith.constant 0 : i32
    %c0_i32_1 = arith.constant 0 : i32
    return %c0_i32, %c0_i32_0, %arg1, %arg0 : i32, i32, i32, i32
  }
}

</mosaic_0001>

<bundles_post_ra>
// kernel: spectral_conv2d.1
= control target key start
LH: loop header
LB: loop body
LE: loop exit
PB: predicated region body
PF: predicated region fallthrough
CT: control target
= control target key end

     0   :  { %v25_v0 = vlaneseq  ;;  %s700_s0 = inlined_call_operand.vmem [shape: f32[2,2,4,256], index: 0, kind: input, shape index: {}]   ;;  %s701_s1 = inlined_call_operand.vmem [shape: f32[2,4,4,256], index: 1, kind: input, shape index: {}]   ;;  %s702_s2 = inlined_call_operand.vmem [shape: f32[2,2,4,256], index: 2, kind: output, shape index: {}]  }
   0x1   :  { %v447_v1 = vld [vmem:[%s700_s0] ss:$4 sm:$0x3]  ;;  %v406_v2 = vld [vmem:[%s700_s0 + $0x10] ss:$4 sm:$0x3] }
   0x2   :  { %v455_v3 = vld [vmem:[%s701_s1] sm:$0xff]  ;;  %v21_v5 = vadd.f32 %v406_v2, %v447_v1  ;;  %v26_v6 = vshrl.u32 %v25_v0, 7  ;;  %v411_v8 = vld [vmem:[%s700_s0 + $0x11] ss:$4 sm:$0x3]  ;;  %v472_v9 = vld [vmem:[%s701_s1 + $0x8] sm:$0xff] }
   0x3   :  { %v408_v4 = vld [vmem:[%s701_s1 + $0x20] sm:$0xff]  ;;  %v414_v10 = vld [vmem:[%s701_s1 + $0x28] sm:$0xff]  ;;  %v417_v17 = vld [vmem:[%s700_s0 + $0x12] ss:$4 sm:$0x3] }
   0x4   :  { %v464_v7 = vld [vmem:[%s700_s0 + $0x1] ss:$4 sm:$0x3]  ;;  %v477_v11 = vsub.s32 0, %v26_v6  ;;  %v479_v12 = vsub.s32 1, %v26_v6  ;;  %v488_v15 = vadd.f32 %v408_v4, %v455_v3  ;;  %v491_v16 = vadd.f32 %v414_v10, %v472_v9  ;;  %v499_v18 = vld [vmem:[%s701_s1 + $0x10] sm:$0xff] }
   0x5   :  { %v113_v13 = vadd.f32 %v411_v8, %v464_v7  ;;  %v485_v14 = vld [vmem:[%s700_s0 + $0x2] ss:$4 sm:$0x3]  ;;  %v504_v19 = vld [vmem:[%s701_s1 + $0x30] sm:$0xff]  ;;  %v507_v20 = vsub.f32 %v408_v4, %v455_v3  ;;  %v510_v21 = vsub.f32 %v414_v10, %v472_v9  ;;  %v538_v40 = vld [vmem:[%s701_s1 + $0x18] sm:$0xff] }
   0x6   :  { %v28_v22 = vrot.slane %v21_v5, %v477_v11  ;;  %v32_v23 = vrot.slane %v21_v5, %v479_v12  ;;  %v78_v24 = vrot.slane %v406_v2, %v477_v11  ;;  %v82_v25 = vrot.slane %v406_v2, %v479_v12  ;;  %v528_v34 = vld [vmem:[%s700_s0 + $0x3] ss:$4 sm:$0x3]  ;;  %v423_v35 = vld [vmem:[%s700_s0 + $0x13] ss:$4 sm:$0x3] }
   0x7   :  { %v120_v26 = vrot.slane %v113_v13, %v477_v11  ;;  %v124_v27 = vrot.slane %v113_v13, %v479_v12  ;;  %v170_v28 = vrot.slane %v411_v8, %v477_v11  ;;  %v174_v29 = vrot.slane %v411_v8, %v479_v12  ;;  %v543_v41 = vld [vmem:[%s701_s1 + $0x38] sm:$0xff]  ;;  %v559_v50 = vld [vmem:[%s700_s0 + $0x8] ss:$4 sm:$0x3] }
   0x8   :  { %v41_v30 = vcombine.low %v28_v22, %v32_v23  ;;  %v91_v31 = vcombine.low %v78_v24, %v82_v25  ;;  %v209_v32 = vadd.f32 %v417_v17, %v485_v14  ;;  %v523_v33 = vadd.f32 %v504_v19, %v499_v18  ;;  %v407_v51 = vld [vmem:[%s700_s0 + $0x18] ss:$4 sm:$0x3]  ;;  %v573_v56 = vld [vmem:[%s700_s0 + $0x9] ss:$4 sm:$0x3] }
   0x9   :  { %v133_v36 = vcombine.low %v120_v26, %v124_v27  ;;  %v183_v37 = vcombine.low %v170_v28, %v174_v29  ;;  %v266_v38 = vrot.slane %v417_v17, %v477_v11  ;;  %v270_v39 = vrot.slane %v417_v17, %v479_v12  ;;  %v412_v57 = vld [vmem:[%s700_s0 + $0x19] ss:$4 sm:$0x3]  ;;  %v596_v23 = vld [vmem:[%s700_s0 + $0xa] ss:$4 sm:$0x3] }
   0xa   :  { %v546_v42 = vmul.f32 %v41_v30, %v455_v3  ;;  %v95_v43 = vmul.f32 %v91_v31, %v488_v15  ;;  %v216_v44 = vrot.slane %v209_v32, %v477_v11  ;;  %v220_v45 = vrot.slane %v209_v32, %v479_v12  ;;  %v418_v24 = vld [vmem:[%s700_s0 + $0x1a] ss:$4 sm:$0x3] }
   0xb   :  { %v552_v46 = vmul.f32 %v472_v9, %v133_v36  ;;  %v187_v47 = vmul.f32 %v183_v37, %v491_v16  ;;  %v279_v48 = vcombine.low %v266_v38, %v270_v39  ;;  %v305_v49 = vadd.f32 %v423_v35, %v528_v34  ;;  %v614_v39 = vld [vmem:[%s700_s0 + $0xb] ss:$4 sm:$0x3] }
   0xc   :  { %v97_v52 = vsub.f32 %v546_v42, %v95_v43  ;;  %v229_v53 = vcombine.low %v216_v44, %v220_v45  ;;  %v567_v54 = vadd.f32 %v543_v41, %v538_v40  ;;  %v362_v55 = vrot.slane %v423_v35, %v477_v11  ;;  %v424_v43 = vld [vmem:[%s700_s0 + $0x1b] ss:$4 sm:$0x3] }
   0xd   :  { %v189_v58 = vsub.f32 %v552_v46, %v187_v47  ;;  %v283_v59 = vmul.f32 %v279_v48, %v523_v33  ;;  %v312_v60 = vrot.slane %v305_v49, %v477_v11  ;;  %v316_v61 = vrot.slane %v305_v49, %v479_v12 }
   0xe   :  { %v583_v62 = vmul.f32 %v499_v18, %v229_v53  ;;  %v366_v63 = vrot.slane %v423_v35, %v479_v12  ;;  %v22_v0 = vadd.f32 %v407_v51, %v559_v50  ;;  %v86_v2 = vrot.slane %v407_v51, %v477_v11 }
   0xf   :  { %v193_v4 = vadd.f32 %v189_v58, %v97_v52  ;;  %v325_v5 = vcombine.low %v312_v60, %v316_v61  ;;  %v90_v6 = vrot.slane %v407_v51, %v479_v12  ;;  %v114_v8 = vadd.f32 %v412_v57, %v573_v56 }
  0x10   :  { %v285_v10 = vsub.f32 %v583_v62, %v283_v59  ;;  %v375_v13 = vcombine.low %v362_v55, %v366_v63  ;;  %v36_v17 = vrot.slane %v22_v0, %v477_v11  ;;  %v40_v22 = vrot.slane %v22_v0, %v479_v12 }
  0x11   :  { %v602_v25 = vmul.f32 %v538_v40, %v325_v5  ;;  %v92_v26 = vcombine.low %v86_v2, %v90_v6  ;;  %v128_v27 = vrot.slane %v114_v8, %v477_v11  ;;  %v132_v28 = vrot.slane %v114_v8, %v479_v12 }
  0x12   :  { %v289_v29 = vadd.f32 %v285_v10, %v193_v4  ;;  %v379_v30 = vmul.f32 %v375_v13, %v567_v54  ;;  %v42_v31 = vcombine.low %v36_v17, %v40_v22  ;;  %v178_v32 = vrot.slane %v412_v57, %v477_v11 }
  0x13   :  { %v96_v35 = vmul.f32 %v92_v26, %v488_v15  ;;  %v134_v36 = vcombine.low %v128_v27, %v132_v28  ;;  %v182_v37 = vrot.slane %v412_v57, %v479_v12  ;;  %v210_v38 = vadd.f32 %v418_v24, %v596_v23 }
  0x14   :  { %v381_v44 = vsub.f32 %v602_v25, %v379_v30  ;;  %v621_v45 = vmul.f32 %v42_v31, %v455_v3  ;;  %v274_v15 = vrot.slane %v418_v24, %v477_v11  ;;  %v278_v47 = vrot.slane %v418_v24, %v479_v12 }
  0x15   :  { %v626_v48 = vmul.f32 %v472_v9, %v134_v36  ;;  %v184_v49 = vcombine.low %v178_v32, %v182_v37  ;;  %v224_v51 = vrot.slane %v210_v38, %v477_v11  ;;  %v228_v52 = vrot.slane %v210_v38, %v479_v12 }
  0x16   :  { %v385_v53 = vadd.f32 %v381_v44, %v289_v29  ;;  %v98_v55 = vsub.f32 %v621_v45, %v96_v35  ;;  %v280_v57 = vcombine.low %v274_v15, %v278_v47  ;;  %v306_v58 = vadd.f32 %v424_v43, %v614_v39 }
  0x17   :  { %v188_v3 = vmul.f32 %v184_v49, %v491_v16  ;;  %v230_v59 = vcombine.low %v224_v51, %v228_v52  ;;  %v370_v60 = vrot.slane %v424_v43, %v477_v11  ;;  %v374_v61 = vrot.slane %v424_v43, %v479_v12 }
  0x18   :  { %389 = vst [vmem:[%s702_s2] sm:$0xff] %v385_v53  ;;  %v284_v9 = vmul.f32 %v280_v57, %v523_v33  ;;  %v320_v63 = vrot.slane %v306_v58, %v477_v11  ;;  %v324_v0 = vrot.slane %v306_v58, %v479_v12  ;;  %v53_v2 = vrot.slane %v447_v1, %v477_v11 }
  0x19   :  { %v190_v16 = vsub.f32 %v626_v48, %v188_v3  ;;  %v234_v4 = vmul.f32 %v499_v18, %v230_v59  ;;  %v376_v5 = vcombine.low %v370_v60, %v374_v61  ;;  %v57_v6 = vrot.slane %v447_v1, %v479_v12 }
  0x1a   :  { %v326_v8 = vcombine.low %v320_v63, %v324_v0  ;;  %v145_v10 = vrot.slane %v464_v7, %v477_v11  ;;  %v149_v33 = vrot.slane %v464_v7, %v479_v12  ;;  %v235_v13 = vsub.f32 %v504_v19, %v499_v18 }
  0x1b   :  { %v194_v17 = vadd.f32 %v190_v16, %v98_v55  ;;  %v286_v22 = vsub.f32 %v234_v4, %v284_v9  ;;  %v380_v24 = vmul.f32 %v376_v5, %v567_v54  ;;  %v66_v26 = vcombine.low %v53_v2, %v57_v6 }
  0x1c   :  { %v330_v27 = vmul.f32 %v538_v40, %v326_v8  ;;  %v158_v28 = vcombine.low %v145_v10, %v149_v33  ;;  %v241_v1 = vrot.slane %v485_v14, %v477_v11  ;;  %v245_v29 = vrot.slane %v485_v14, %v479_v12 }
  0x1d   :  { %v290_v30 = vadd.f32 %v286_v22, %v194_v17  ;;  %v70_v7 = vmul.f32 %v66_v26, %v507_v20  ;;  %v331_v18 = vsub.f32 %v543_v41, %v538_v40  ;;  %v337_v19 = vrot.slane %v528_v34, %v477_v11 }
  0x1e   :  { %v382_v54 = vsub.f32 %v330_v27, %v380_v24  ;;  %v162_v31 = vmul.f32 %v158_v28, %v510_v21  ;;  %v254_v32 = vcombine.low %v241_v1, %v245_v29  ;;  %v341_v35 = vrot.slane %v528_v34, %v479_v12 }
  0x1f   :  { %v99_v36 = vadd.f32 %v70_v7, %v546_v42  ;;  %v61_v14 = vrot.slane %v559_v50, %v477_v11  ;;  %v65_v37 = vrot.slane %v559_v50, %v479_v12  ;;  %v153_v40 = vrot.slane %v573_v56, %v477_v11 }
  0x20   :  { %v386_v41 = vadd.f32 %v382_v54, %v290_v30  ;;  %v191_v38 = vadd.f32 %v162_v31, %v552_v46  ;;  %v258_v43 = vmul.f32 %v254_v32, %v235_v13  ;;  %v350_v44 = vcombine.low %v337_v19, %v341_v35 }
  0x21   :  { %v67_v15 = vcombine.low %v61_v14, %v65_v37  ;;  %v157_v34 = vrot.slane %v573_v56, %v479_v12  ;;  %v249_v42 = vrot.slane %v596_v23, %v477_v11  ;;  %v253_v47 = vrot.slane %v596_v23, %v479_v12 }
  0x22   :  { %390 = vst [vmem:[%s702_s2 + $0x8] sm:$0xff] %v386_v41  ;;  %v195_v50 = vadd.f32 %v191_v38, %v99_v36  ;;  %v287_v49 = vadd.f32 %v258_v43, %v583_v62  ;;  %v354_v46 = vmul.f32 %v350_v44, %v331_v18  ;;  %v345_v51 = vrot.slane %v614_v39, %v477_v11 }
  0x23   :  { %v71_v52 = vmul.f32 %v67_v15, %v507_v20  ;;  %v159_v56 = vcombine.low %v153_v40, %v157_v34  ;;  %v255_v53 = vcombine.low %v249_v42, %v253_v47  ;;  %v349_v55 = vrot.slane %v614_v39, %v479_v12 }
  0x24   :  { %v291_v57 = vadd.f32 %v287_v49, %v195_v50  ;;  %v383_v23 = vadd.f32 %v354_v46, %v602_v25 }
  0x25   :  { %v100_v58 = vadd.f32 %v71_v52, %v621_v45  ;;  %v163_v3 = vmul.f32 %v159_v56, %v510_v21  ;;  %v259_v59 = vmul.f32 %v255_v53, %v235_v13  ;;  %v351_v62 = vcombine.low %v345_v51, %v349_v55 }
  0x26   :  { %v387_v60 = vadd.f32 %v383_v23, %v291_v57 }
  0x27   :  { %v192_v61 = vadd.f32 %v163_v3, %v626_v48  ;;  %v288_v11 = vadd.f32 %v259_v59, %v234_v4  ;;  %v355_v9 = vmul.f32 %v351_v62, %v331_v18 }
  0x28   :  { %427 = vst [vmem:[%s702_s2 + $0x10] sm:$0xff] %v387_v60 }
  0x29   :  { %v196_v20 = vadd.f32 %v192_v61, %v100_v58  ;;  %v384_v12 = vadd.f32 %v355_v9, %v330_v27 }
  0x2b   :  { %v292_v39 = vadd.f32 %v288_v11, %v196_v20 }
  0x2d   :  { %v388_v63 = vadd.f32 %v384_v12, %v292_v39 }
  0x2f   :  { %428 = vst [vmem:[%s702_s2 + $0x18] sm:$0xff] %v388_v63 }

// kernel: reverse.0
= control target key start
LH: loop header
LB: loop body
LE: loop exit
PB: predicated region body
PF: predicated region fallthrough
CT: control target
= control target key end

     0   :  { %v71_v3 = vlaneseq  ;;  %v64_v9 = vld [vmem:[#allocation0 + $0x7] ss:$-1 sm:$0xff]  ;;  %v78_v12 = vld [vmem:[#allocation0 + $0x17] ss:$-1 sm:$0xff]  ;;  %s329_s0 = inlined_call_operand.vmem [shape: f32[2,4,16,7], index: 0, kind: input, shape index: {}]   ;;  %s330_s1 = inlined_call_operand.vmem [shape: f32[2,4,16,7], index: 1, kind: output, shape index: {}]  }
   0x1   :  { %v44_v0 = vld [vmem:[%s329_s0] sm:$0xff]  ;;  %v46_v1 = vld [vmem:[%s329_s0 + $0x8] sm:$0xff]  ;;  %v48_v2 = vld [vmem:[%s329_s0 + $0x10] sm:$0xff]  ;;  %v65_v10 = vrot.slane %v64_v9, 1  ;;  %v79_v14 = vrot.slane %v78_v12, 1 }
   0x2   :  { %45 = vst [vmem:[#allocation0 + $0x8] sm:$0xff] %v44_v0  ;;  %47 = vst [vmem:[#allocation0 + $0x18] sm:$0xff] %v46_v1  ;;  %v50_v4 = vld [vmem:[%s329_s0 + $0x18] sm:$0xff]  ;;  %v52_v5 = vld [vmem:[%s329_s0 + $0x20] sm:$0xff]  ;;  %v72_v11 = vshrl.u32 %v71_v3, 7 }
   0x3   :  { %49 = vst [vmem:[#allocation0 + $0x28] sm:$0xff] %v48_v2  ;;  %v54_v6 = vld [vmem:[%s329_s0 + $0x28] sm:$0xff]  ;;  %51 = vst [vmem:[#allocation0 + $0x38] sm:$0xff] %v50_v4  ;;  %v56_v7 = vld [vmem:[%s329_s0 + $0x30] sm:$0xff] }
   0x4   :  { %53 = vst [vmem:[#allocation0 + $0x48] sm:$0xff] %v52_v5  ;;  %55 = vst [vmem:[#allocation0 + $0x58] sm:$0xff] %v54_v6  ;;  %v58_v8 = vld [vmem:[%s329_s0 + $0x38] sm:$0xff]  ;;  %v92_v13 = vld [vmem:[#allocation0 + $0x27] ss:$-1 sm:$0xff]  ;;  %vm73_vm0 = vcmp.lt.s32.totalorder %v72_v11, 7 }
   0x5   :  { %57 = vst [vmem:[#allocation0 + $0x68] sm:$0xff] %v56_v7  ;;  %59 = vst [vmem:[#allocation0 + $0x78] sm:$0xff] %v58_v8  ;;  %v93_v15 = vrot.slane %v92_v13, 1  ;;  %v106_v16 = vld [vmem:[#allocation0 + $0x37] ss:$-1 sm:$0xff] }
   0x6   :  { %66 = vst [vmem:[#allocation1] sm:$0xff] %v65_v10  ;;  %v107_v17 = vrot.slane %v106_v16, 1  ;;  %v120_v18 = vld [vmem:[#allocation0 + $0x47] ss:$-1 sm:$0xff]  ;;  %v134_v19 = vld [vmem:[#allocation0 + $0x57] ss:$-1 sm:$0xff] }
   0x7   :  { %80 = vst [vmem:[#allocation1 + $0x8] sm:$0xff] %v79_v14  ;;  %94 = vst [vmem:[#allocation1 + $0x10] sm:$0xff] %v93_v15  ;;  %v121_v20 = vrot.slane %v120_v18, 1  ;;  %v135_v21 = vrot.slane %v134_v19, 1  ;;  %v148_v22 = vld [vmem:[#allocation0 + $0x67] ss:$-1 sm:$0xff] }
   0x8   :  { %v162_v23 = vld [vmem:[#allocation0 + $0x77] ss:$-1 sm:$0xff]  ;;  %108 = vst [vmem:[#allocation1 + $0x18] sm:$0xff] %v107_v17  ;;  %v149_v24 = vrot.slane %v148_v22, 1 }
   0x9   :  { %v163_v25 = vrot.slane %v162_v23, 1  ;;  %v69_v26 = vld [vmem:[#allocation0 + $0xf] ss:$-1 sm:$0xff]  ;;  %v83_v27 = vld [vmem:[#allocation0 + $0x1f] ss:$-1 sm:$0xff]  ;;  %122 = vst [vmem:[#allocation1 + $0x20] sm:$0xff] %v121_v20 }
   0xa   :  { %v97_v28 = vld [vmem:[#allocation0 + $0x2f] ss:$-1 sm:$0xff]  ;;  %136 = vst [vmem:[#allocation1 + $0x28] sm:$0xff] %v135_v21  ;;  %v70_v29 = vrot.slane %v69_v26, 1  ;;  %v84_v30 = vrot.slane %v83_v27, 1  ;;  %150 = vst [vmem:[#allocation1 + $0x30] sm:$0xff] %v149_v24 }
   0xb   :  { %v98_v31 = vrot.slane %v97_v28, 1  ;;  %v111_v32 = vld [vmem:[#allocation0 + $0x3f] ss:$-1 sm:$0xff]  ;;  %164 = vst [vmem:[#allocation1 + $0x38] sm:$0xff] %v163_v25  ;;  %v125_v34 = vld [vmem:[#allocation0 + $0x4f] ss:$-1 sm:$0xff] }
   0xc   :  { %v112_v33 = vrot.slane %v111_v32, 1  ;;  %v139_v35 = vld [vmem:[#allocation0 + $0x5f] ss:$-1 sm:$0xff]  ;;  %74 = vst.msk [vmem:[#allocation1] sm:$0xff] %vm73_vm0, %v70_v29  ;;  %88 = vst.msk [vmem:[#allocation1 + $0x8] sm:$0xff] %vm73_vm0, %v84_v30  ;;  %v126_v36 = vrot.slane %v125_v34, 1 }
   0xd   :  { %102 = vst.msk [vmem:[#allocation1 + $0x10] sm:$0xff] %vm73_vm0, %v98_v31  ;;  %v140_v37 = vrot.slane %v139_v35, 1  ;;  %v153_v38 = vld [vmem:[#allocation0 + $0x6f] ss:$-1 sm:$0xff]  ;;  %v167_v39 = vld [vmem:[#allocation0 + $0x7f] ss:$-1 sm:$0xff] }
   0xe   :  { %116 = vst.msk [vmem:[#allocation1 + $0x18] sm:$0xff] %vm73_vm0, %v112_v33  ;;  %v154_v40 = vrot.slane %v153_v38, 1  ;;  %v168_v41 = vrot.slane %v167_v39, 1  ;;  %130 = vst.msk [vmem:[#allocation1 + $0x20] sm:$0xff] %vm73_vm0, %v126_v36 }
   0xf   :  { %144 = vst.msk [vmem:[#allocation1 + $0x28] sm:$0xff] %vm73_vm0, %v140_v37 }
  0x10   :  { %158 = vst.msk [vmem:[#allocation1 + $0x30] sm:$0xff] %vm73_vm0, %v154_v40  ;;  %172 = vst.msk [vmem:[#allocation1 + $0x38] sm:$0xff] %vm73_vm0, %v168_v41 }
  0x13   :  { %v214_v42 = vld [vmem:[#allocation1] sm:$0xff]  ;;  %v216_v43 = vld [vmem:[#allocation1 + $0x8] sm:$0xff] }
  0x14   :  { %v218_v44 = vld [vmem:[#allocation1 + $0x10] sm:$0xff]  ;;  %215 = vst [vmem:[%s330_s1] sm:$0xff] %v214_v42  ;;  %217 = vst [vmem:[%s330_s1 + $0x8] sm:$0xff] %v216_v43 }
  0x15   :  { %219 = vst [vmem:[%s330_s1 + $0x10] sm:$0xff] %v218_v44  ;;  %v220_v45 = vld [vmem:[#allocation1 + $0x18] sm:$0xff]  ;;  %v222_v46 = vld [vmem:[#allocation1 + $0x20] sm:$0xff] }
  0x16   :  { %221 = vst [vmem:[%s330_s1 + $0x18] sm:$0xff] %v220_v45  ;;  %v224_v47 = vld [vmem:[#allocation1 + $0x28] sm:$0xff]  ;;  %223 = vst [vmem:[%s330_s1 + $0x20] sm:$0xff] %v222_v46 }
  0x17   :  { %225 = vst [vmem:[%s330_s1 + $0x28] sm:$0xff] %v224_v47  ;;  %v226_v48 = vld [vmem:[#allocation1 + $0x30] sm:$0xff]  ;;  %v228_v49 = vld [vmem:[#allocation1 + $0x38] sm:$0xff] }
  0x18   :  { %227 = vst [vmem:[%s330_s1 + $0x30] sm:$0xff] %v226_v48  ;;  %229 = vst [vmem:[%s330_s1 + $0x38] sm:$0xff] %v228_v49 }

</bundles_post_ra>
